<compile_context>
chip_gen: v5e
topology: v5e:2x2
jax: 0.10.0
libtpu: 0.0.40
codegen_flags: <defaults>
</compile_context>

<pallas_src>
import functools

import jax
import jax.numpy as jnp
from jax.experimental import pallas as pl
from jax.experimental.pallas import tpu as pltpu


def _downsampler_kernel(wt_ref, p_ref, b_ref, g_ref, bt_ref, o_ref, *, m, eps):
    """Fused conv-matmul -> maxpool2x2 -> batchnorm(train) -> relu.

    wt_ref: (Cout, 9*Cin)   conv weight, transposed, cols ordered (dy, dx, ci)
    p_ref:  (9*Cin, 4*M)    im2col patch slab, cols ordered (pool-pos, n, yp, xp)
    b_ref:  (Cout, 1)       conv bias
    g_ref:  (Cout, 1)       BN gamma
    bt_ref: (Cout, 1)       BN beta
    o_ref:  (Cout, M)       output, M = N*Hp*Wp (lane-dense)
    """
    # ---- single MXU matmul for the whole batch, result already lane-major ----
    conv = jnp.dot(wt_ref[...], p_ref[...],
                   preferred_element_type=jnp.float32)            # (Cout, 4*M)

    # ---- 2x2 maxpool == max over the four contiguous 128-lane-aligned chunks ----
    pooled = jnp.maximum(jnp.maximum(conv[:, 0:m], conv[:, m:2 * m]),
                         jnp.maximum(conv[:, 2 * m:3 * m], conv[:, 3 * m:4 * m]))
    pooled = pooled + b_ref[...]          # bias once, after the max (exact identity)

    # ---- BatchNorm (training-mode batch stats, two-pass) + ReLU, in-register ----
    inv_m = 1.0 / float(m)
    mean = jnp.sum(pooled, axis=1, keepdims=True) * inv_m                 # (Cout, 1)
    centered = pooled - mean
    var = jnp.sum(centered * centered, axis=1, keepdims=True) * inv_m     # (Cout, 1)
    scale = g_ref[...] * jax.lax.rsqrt(var + eps)
    y = jnp.maximum(centered * scale + bt_ref[...], 0.0)                  # (Cout, M)

    # ---- single full-width (>=128-lane) unmasked store ----
    o_ref[...] = y.astype(o_ref.dtype)


def _build_patch_slab(x_nchw, Hp, Wp):
    """im2col in the wrapper: (9*Cin, 4*N*Hp*Wp), rows (dy,dx,ci), cols (pool,n,yp,xp)."""
    N, Cin, H, W = x_nchw.shape
    x = jnp.transpose(x_nchw, (0, 2, 3, 1)).astype(jnp.float32)       # NHWC
    xp = jnp.pad(x, ((0, 0), (1, 1), (1, 1), (0, 0)))                 # (N, H+2, W+2, Cin)
    m4 = 4 * N * Hp * Wp
    taps = []
    for dy in range(3):
        for dx in range(3):
            t = xp[:, dy:dy + H, dx:dx + W, :]                        # (N, H, W, Cin)
            t = t.reshape(N, Hp, 2, Wp, 2, Cin)                       # y=2*yp+ry, x=2*xp+rx
            t = jnp.transpose(t, (5, 2, 4, 0, 1, 3))                  # (Cin, ry, rx, N, Hp, Wp)
            taps.append(t.reshape(Cin, m4))
    return jnp.concatenate(taps, axis=0)                              # (9*Cin, 4*M)


def downsampler_block_simplified(x_nchw, w_hwio, b, gamma, beta, eps=1e-3):
    """Forward pass of DownsamplerBlock_simplified.

    x_nchw: (N, Cin, H, W) float32 (PyTorch layout)
    w_hwio: (3, 3, Cin, Cout) conv weight; b: (Cout,) bias
    gamma/beta: (Cout,) BatchNorm affine params; eps matches nn.BatchNorm2d(eps=0.001).
    Returns (N, Cout, H//2, W//2) float32 (PyTorch layout), training-mode BN stats.
    """
    N, Cin, H, W = x_nchw.shape
    Cout = w_hwio.shape[-1]
    assert H % 2 == 0 and W % 2 == 0
    Hp, Wp = H // 2, W // 2
    M = N * Hp * Wp

    # ---- wrapper-side prep: patch slab + transposed weight + (Cout,1) vectors ----
    patches = _build_patch_slab(x_nchw, Hp, Wp)                        # (9*Cin, 4*M)
    wt = jnp.transpose(w_hwio.reshape(9 * Cin, Cout)).astype(jnp.float32)  # (Cout, 9*Cin)
    b2 = b.reshape(Cout, 1).astype(jnp.float32)
    g2 = gamma.reshape(Cout, 1).astype(jnp.float32)
    bt2 = beta.reshape(Cout, 1).astype(jnp.float32)
    # TODO(synk): at realistic shapes cast patches/wt to bf16 (MXU path) and add a
    # batch/row grid with cross-tile BN-stat accumulation; not needed at toy size.

    kernel = functools.partial(_downsampler_kernel, m=M, eps=float(eps))

    vmem = pl.BlockSpec(memory_space=pltpu.MemorySpace.VMEM)
    out = pl.pallas_call(
        kernel,
        out_shape=jax.ShapeDtypeStruct((Cout, M), jnp.float32),
        in_specs=[vmem, vmem, vmem, vmem, vmem],
        out_specs=vmem,
        cost_estimate=pl.CostEstimate(
            flops=2 * Cout * 9 * Cin * 4 * M + 12 * Cout * M,
            transcendentals=Cout,
            bytes_accessed=4 * (wt.size + patches.size + 3 * Cout + Cout * M)),
    )(wt, patches, b2, g2, bt2)

    # Free-ish wrapper rearrangement back to PyTorch NCHW layout.
    return jnp.transpose(out.reshape(Cout, N, Hp, Wp), (1, 0, 2, 3))


if __name__ == "__main__":
    key = jax.random.PRNGKey(0)
    k1, k2, k3, k4, k5 = jax.random.split(key, 5)

    N, Cin, H, W = 2, 4, 16, 16          # ninput=4
    Cout = 8                             # noutput=8

    x = jax.random.normal(k1, (N, Cin, H, W), jnp.float32)
    w_hwio = jax.random.normal(k2, (3, 3, Cin, Cout), jnp.float32) * 0.2
    b = jax.random.normal(k3, (Cout,), jnp.float32) * 0.1
    gamma = 1.0 + 0.1 * jax.random.normal(k4, (Cout,), jnp.float32)
    beta = 0.1 * jax.random.normal(k5, (Cout,), jnp.float32)

    out = jax.block_until_ready(
        downsampler_block_simplified(x, w_hwio, b, gamma, beta, eps=1e-3))

    # Pure-JAX reference of the same forward pass (training-mode BatchNorm stats).
    xn = jnp.transpose(x, (0, 2, 3, 1))
    y = jax.lax.conv_general_dilated(
        xn, w_hwio, (1, 1), 'SAME',
        dimension_numbers=('NHWC', 'HWIO', 'NHWC')) + b
    y = jax.lax.reduce_window(y, -jnp.inf, jax.lax.max,
                              (1, 2, 2, 1), (1, 2, 2, 1), 'VALID')
    mean = y.mean(axis=(0, 1, 2))
    var = y.var(axis=(0, 1, 2))
    y = jnp.maximum((y - mean) / jnp.sqrt(var + 1e-3) * gamma + beta, 0.0)
    ref = jnp.transpose(y, (0, 3, 1, 2))

    assert out.shape == (N, Cout, H // 2, W // 2), out.shape
    max_err = float(jnp.max(jnp.abs(out - ref)))
    assert max_err < 1e-3, max_err
    print("KERNEL_OK")
</pallas_src>

<mosaic_0001>
module attributes {stable_mosaic.version = 11 : i64} {
  func.func @_downsampler_kernel(%arg0: memref<8x36xf32, #tpu.memory_space<vmem>>, %arg1: memref<36x512xf32, #tpu.memory_space<vmem>>, %arg2: memref<8x1xf32, #tpu.memory_space<vmem>>, %arg3: memref<8x1xf32, #tpu.memory_space<vmem>>, %arg4: memref<8x1xf32, #tpu.memory_space<vmem>>, %arg5: memref<8x128xf32, #tpu.memory_space<vmem>>) attributes {dimension_semantics = [], scalar_prefetch = 0 : i64, scratch_operands = 0 : i64, tpu.core_type = #tpu.core_type<tc>} {
    %c0 = arith.constant 0 : index
    %c0_0 = arith.constant 0 : index
    %0 = vector.load %arg0[%c0, %c0_0] : memref<8x36xf32, #tpu.memory_space<vmem>>, vector<8x36xf32>
    %c0_1 = arith.constant 0 : index
    %c0_2 = arith.constant 0 : index
    %1 = vector.load %arg1[%c0_1, %c0_2] : memref<36x512xf32, #tpu.memory_space<vmem>>, vector<36x512xf32>
    %cst = arith.constant dense<0.000000e+00> : vector<8x512xf32>
    %2 = tpu.matmul %0, %1, %cst {dimension_numbers = #tpu.dot_dimension_numbers<[1], [0], [0], [1], [0, 0, 1, 1], [], []>} : vector<8x36xf32>, vector<36x512xf32>, vector<8x512xf32> -> vector<8x512xf32>
    %3 = vector.extract_strided_slice %2 {offsets = [0, 0], sizes = [8, 128], strides = [1, 1]} : vector<8x512xf32> to vector<8x128xf32>
    %4 = vector.extract_strided_slice %2 {offsets = [0, 128], sizes = [8, 128], strides = [1, 1]} : vector<8x512xf32> to vector<8x128xf32>
    %5 = arith.maximumf %3, %4 : vector<8x128xf32>
    %6 = vector.extract_strided_slice %2 {offsets = [0, 256], sizes = [8, 128], strides = [1, 1]} : vector<8x512xf32> to vector<8x128xf32>
    %7 = vector.extract_strided_slice %2 {offsets = [0, 384], sizes = [8, 128], strides = [1, 1]} : vector<8x512xf32> to vector<8x128xf32>
    %8 = arith.maximumf %6, %7 : vector<8x128xf32>
    %9 = arith.maximumf %5, %8 : vector<8x128xf32>
    %c0_3 = arith.constant 0 : index
    %c0_4 = arith.constant 0 : index
    %10 = vector.load %arg2[%c0_3, %c0_4] : memref<8x1xf32, #tpu.memory_space<vmem>>, vector<8x1xf32>
    %11 = vector.broadcast %10 : vector<8x1xf32> to vector<8x128xf32>
    %12 = arith.addf %9, %11 : vector<8x128xf32>
    %cst_5 = arith.constant dense<0.000000e+00> : vector<8xf32>
    %13 = vector.multi_reduction <add>, %12, %cst_5 [1] : vector<8x128xf32> to vector<8xf32>
    %14 = vector.shape_cast %13 : vector<8xf32> to vector<8x1xf32>
    %cst_6 = arith.constant 7.812500e-03 : f32
    %15 = vector.broadcast %cst_6 : f32 to vector<8x1xf32>
    %16 = arith.mulf %14, %15 : vector<8x1xf32>
    %17 = vector.broadcast %16 : vector<8x1xf32> to vector<8x128xf32>
    %18 = arith.subf %12, %17 : vector<8x128xf32>
    %19 = arith.mulf %18, %18 : vector<8x128xf32>
    %cst_7 = arith.constant dense<0.000000e+00> : vector<8xf32>
    %20 = vector.multi_reduction <add>, %19, %cst_7 [1] : vector<8x128xf32> to vector<8xf32>
    %21 = vector.shape_cast %20 : vector<8xf32> to vector<8x1xf32>
    %cst_8 = arith.constant 7.812500e-03 : f32
    %22 = vector.broadcast %cst_8 : f32 to vector<8x1xf32>
    %23 = arith.mulf %21, %22 : vector<8x1xf32>
    %c0_9 = arith.constant 0 : index
    %c0_10 = arith.constant 0 : index
    %24 = vector.load %arg3[%c0_9, %c0_10] : memref<8x1xf32, #tpu.memory_space<vmem>>, vector<8x1xf32>
    %cst_11 = arith.constant 1.000000e-03 : f32
    %25 = vector.broadcast %cst_11 : f32 to vector<8x1xf32>
    %26 = arith.addf %23, %25 : vector<8x1xf32>
    %27 = math.rsqrt %26 : vector<8x1xf32>
    %28 = arith.mulf %24, %27 : vector<8x1xf32>
    %29 = vector.broadcast %28 : vector<8x1xf32> to vector<8x128xf32>
    %30 = arith.mulf %18, %29 : vector<8x128xf32>
    %c0_12 = arith.constant 0 : index
    %c0_13 = arith.constant 0 : index
    %31 = vector.load %arg4[%c0_12, %c0_13] : memref<8x1xf32, #tpu.memory_space<vmem>>, vector<8x1xf32>
    %32 = vector.broadcast %31 : vector<8x1xf32> to vector<8x128xf32>
    %33 = arith.addf %30, %32 : vector<8x128xf32>
    %cst_14 = arith.constant 0.000000e+00 : f32
    %34 = vector.broadcast %cst_14 : f32 to vector<8x128xf32>
    %35 = arith.maximumf %33, %34 : vector<8x128xf32>
    %c0_15 = arith.constant 0 : index
    %c0_16 = arith.constant 0 : index
    %36 = vector.load %arg5[%c0_15, %c0_16] : memref<8x128xf32, #tpu.memory_space<vmem>>, vector<8x128xf32>
    tpu.vector_store %arg5[%c0_15, %c0_16], %35 {strides = array<i32>} : memref<8x128xf32, #tpu.memory_space<vmem>>, vector<8x128xf32>,
    return
  }
}

</mosaic_0001>

<bundles_post_ra>
// kernel: tpu_custom_call.1
= control target key start
LH: loop header
LB: loop body
LE: loop exit
PB: predicated region body
PF: predicated region fallthrough
CT: control target
= control target key end

     0   :  { %10 = vsyncpa [#allocation3], 0  ;;  %s349_s0 = inlined_call_operand.vmem [shape: f32[8,36], index: 0, kind: input, shape index: {}]   ;;  %s350_s1 = inlined_call_operand.hbm [shape: f32[36,512], index: 1, kind: input, shape index: {}]   ;;  %s351_s2 = inlined_call_operand.vmem [shape: f32[8,1], index: 2, kind: input, shape index: {}]   ;;  %s352_s3 = inlined_call_operand.vmem [shape: f32[8,1], index: 3, kind: input, shape index: {}]   ;;  %s353_s4 = inlined_call_operand.vmem [shape: f32[8,1], index: 4, kind: input, shape index: {}]   ;;  %s354_s5 = inlined_call_operand.hbm [shape: f32[8,128], index: 5, kind: output, shape index: {}]  }
   0x1   :  { %11 = vsyncpa [#allocation4], 0  ;;  %s18_s20 = sshll.u32 %s350_s1, 4  ;;  %s288_s21 = smov [#allocation2]   ;;  %s19_s20 = int_to_ptr.hbm [resolvable:$true] %s18_s20 }
   0x2   :  { %s20_s22 = sshll.u32 %s288_s21, 4  ;;  %s289_s23 = smov 512   ;;  %s21_s22 = int_to_ptr.vmem [resolvable:$true] %s20_s22 }
   0x3   :  { %s290_s24 = smov 32  }
   0x4   :  { %26 = dma.hbm_to_vmem [thread:$0]  %s19_s20, 2560, %s21_s22, [#allocation3], %s289_s23, %s289_s23, %s290_s24  }
   0x5   :  { %284 = dma.done.wait [#allocation3], 2560  }
   0x6   :  { %285 = vsyncadd [#allocation3], 4294964736  ;;  %v291_v0 = vmov 0   ;;  %vm62_vm0 = vcmask 1043456   ;;  %v56_v1 = vld [vmem:[#allocation2 + $0x90] sm:$0xf] }
   0x7   :  { %231 = vset.pattern.permute.xlu0 %v291_v0  ;;  %232 = vset.pattern.permute.xlu1 %v291_v0  ;;  %v57_v2 = vld [vmem:[#allocation2 + $0x98] sm:$0xf]  ;;  %v52_v3 = vld [vmem:[#allocation2 + $0x70] sm:$0xff]  ;;  %v54_v7 = vld [vmem:[#allocation2 + $0x80] sm:$0xf]  ;;  %vm58_vm1 = vcmask 293888  }
   0x8   :  { %233 = vset.pattern.permute.xlu2 %v291_v0  ;;  %222 = vmatpush.msk.msra.mxu2 %vm62_vm0, %v56_v1  ;;  %v53_v4 = vld [vmem:[#allocation2 + $0x78] sm:$0xff]  ;;  %v48_v5 = vld [vmem:[#allocation2 + $0x50] sm:$0xff]  ;;  %v55_v8 = vld [vmem:[#allocation2 + $0x88] sm:$0xf]  ;;  %s208_s8 = sshll.u32 %s354_s5, 4  ;;  %s209_s8 = int_to_ptr.hbm [resolvable:$true] %s208_s8 }
   0x9   :  { %224 = vmatpush.msk.msra.mxu3 %vm62_vm0, %v57_v2  ;;  %v49_v6 = vld [vmem:[#allocation2 + $0x58] sm:$0xff]  ;;  %v50_v9 = vld [vmem:[#allocation2 + $0x60] sm:$0xff]  ;;  %v51_v10 = vld [vmem:[#allocation2 + $0x68] sm:$0xff]  ;;  %218 = vmatpush.msk.msra.mxu0 %vm62_vm0, %v54_v7 }
   0xa   :  { %127 = vmatpush.msra.mxu2 %v52_v3  ;;  %220 = vmatpush.msk.msra.mxu1 %vm62_vm0, %v55_v8  ;;  %v44_v11 = vld [vmem:[#allocation2 + $0x30] sm:$0xff]  ;;  %v45_v12 = vld [vmem:[#allocation2 + $0x38] sm:$0xff]  ;;  %v46_v13 = vld [vmem:[#allocation2 + $0x40] sm:$0xff] }
   0xb   :  { %147 = vmatpush.msra.mxu3 %v53_v4  ;;  %v47_v14 = vld [vmem:[#allocation2 + $0x48] sm:$0xff]  ;;  %87 = vmatpush.msra.mxu0 %v50_v9  ;;  %v40_v15 = vld [vmem:[#allocation2 + $0x10] sm:$0xff]  ;;  %v41_v16 = vld [vmem:[#allocation2 + $0x18] sm:$0xff] }
   0xc   :  { %128 = vmatpush.msra.mxu2 %v48_v5  ;;  %107 = vmatpush.msra.mxu1 %v51_v10  ;;  %v37_v17 = vld [vmem:[%s349_s0] sm:$0xff]  ;;  %v43_v19 = vld [vmem:[#allocation2 + $0x28] sm:$0xff] }
   0xd   :  { %148 = vmatpush.msra.mxu3 %v49_v6  ;;  %88 = vmatpush.msra.mxu0 %v46_v13  ;;  %v42_v18 = vld [vmem:[#allocation2 + $0x20] sm:$0xff]  ;;  %v39_v22 = vld [vmem:[#allocation2 + $0x8] sm:$0xff] }
   0xe   :  { %129 = vmatpush.msra.mxu2 %v44_v11  ;;  %108 = vmatpush.msra.mxu1 %v47_v14  ;;  %v158_v20 = vld [vmem:[%s351_s2] sm:$0xff] }
   0xf   :  { %149 = vmatpush.msra.mxu3 %v45_v12  ;;  %v38_v21 = vld [vmem:[#allocation2] sm:$0xff]  ;;  %89 = vmatpush.msra.mxu0 %v42_v18 }
  0x10   :  { %130 = vmatpush.msra.mxu2 %v40_v15  ;;  %109 = vmatpush.msra.mxu1 %v43_v19  ;;  %v192_v36 = vld [vmem:[%s353_s4] sm:$0xff]  ;;  %s292_s4 = smov [#allocation5]  }
  0x11   :  { %150 = vmatpush.msra.mxu3 %v41_v16  ;;  %223 = vmatmul.msk.f32.vlgmr.msra.gmra.mxu2 %vm58_vm1, %v37_v17  ;;  %v173_v45 = vld [vmem:[%s352_s3] sm:$0xff]  ;;  %s206_s30 = sshll.u32 %s292_s4, 4  ;;  %s207_s30 = int_to_ptr.vmem [resolvable:$true] %s206_s30 }
  0x12   :  { %225 = vmatmul.msk.f32.vlgmr.msra.gmra.mxu3 %vm58_vm1, %v37_v17  ;;  %161 = vperm.xlu0 %231, %v158_v20  }
  0x13   :  { %90 = vmatpush.msra.mxu0 %v38_v21  ;;  %110 = vmatpush.msra.mxu1 %v39_v22 }
  0x14   :  { %219 = vmatmul.msk.f32.vlgmr.msra.gmra.mxu0 %vm58_vm1, %v37_v17  ;;  %221 = vmatmul.msk.f32.vlgmr.msra.gmra.mxu1 %vm58_vm1, %v37_v17 }
  0x15   :  { %195 = vperm.xlu2 %233, %v192_v36  }
  0x6f   :  { %v196_v50 = vpop.permute.xlu2 %195 }
  0x84   :  { %v162_v29 = vpop.permute.xlu0 %161 }
  0x91   :  { %v92_v23 = vpop.f32.mrf.mxu0  ;;  %v112_v24 = vpop.f32.mrf.mxu1 }
  0x92   :  { %v155_v25 = vmax.f32 %v92_v23, %v112_v24 }
  0x94   :  { %v132_v26 = vpop.f32.mrf.mxu2 }
  0x95   :  { %v152_v27 = vpop.f32.mrf.mxu3 }
  0x96   :  { %v156_v28 = vmax.f32 %v132_v26, %v152_v27 }
  0x98   :  { %v157_v30 = vmax.f32 %v155_v25, %v156_v28 }
  0x9a   :  { %v164_v31 = vadd.f32 %v162_v29, %v157_v30 }
  0x9c   :  { %165 = vadd.xlane.f32.xlu0 %v164_v31 }
 0x10f   :  { %v166_v32 = vpop.xlane.xlu0 %165 }
 0x110   :  { %v167_v33 = vmul.f32 0.0078125, %v166_v32 }
 0x112   :  { %v168_v34 = vsub.f32 %v164_v31, %v167_v33 }
 0x114   :  { %v169_v35 = vmul.f32 %v168_v34, %v168_v34 }
 0x116   :  { %170 = vadd.xlane.f32.xlu1 %v169_v35 }
 0x189   :  { %v171_v37 = vpop.xlane.xlu1 %170 }
 0x18a   :  { %v172_v38 = vmul.f32 0.0078125, %v171_v37 }
 0x18c   :  { %v174_v39 = vadd.f32 0.001, %v172_v38 }
 0x18e   :  { %234 = vrsqrt.f32 %v174_v39  ;;  %vm181_vm3 = vweird.f32 %v174_v39 }
 0x194   :  { %v235_v40 = vpop.eup %234 }
 0x195   :  { %v176_v41 = vmul.f32 %v235_v40, %v174_v39  ;;  %vm182_vm2 = vweird.f32 %v235_v40 }
 0x196   :  { %vm183_vm4 = vmor %vm181_vm3, %vm182_vm2 }
 0x197   :  { %v177_v42 = vmul.f32 %v235_v40, %v176_v41 }
 0x199   :  { %v178_v43 = vmul.f32 0.5, %v177_v42 }
 0x19b   :  { %v179_v44 = vsub.f32 1.5, %v178_v43 }
 0x19d   :  { %v180_v46 = vmul.f32 %v235_v40, %v179_v44 }
 0x19f   :  { %v184_v47 = vsel %vm183_vm4, %v235_v40, %v180_v46 }
 0x1a0   :  { %v185_v48 = vmul.f32 %v184_v47, %v173_v45 }
 0x1a2   :  { %188 = vperm.xlu1 %232, %v185_v48  }
 0x214   :  { %v189_v49 = vpop.permute.xlu1 %188 }
 0x215   :  { %v191_v51 = vmul.f32 %v189_v49, %v168_v34 }
 0x217   :  { %v198_v52 = vadd.f32 %v196_v50, %v191_v51 }
 0x219   :  { %v199_v53 = vmax.f32 %v198_v52, 0.0 }
 0x21b   :  { %200 = vst [vmem:[#allocation5] sm:$0xff] %v199_v53 }
 0x21c   :  { %211 = dma.vmem_to_hbm [thread:$0]  %s207_s30, 128, %s209_s8, [#allocation4]  }
 0x21d   :  { %286 = dma.done.wait [#allocation4], 128  }
 0x21e   :  { %287 = vsyncadd [#allocation4], 4294967168 }
 0x21f   :  { %216 = vsyncpa [#allocation3], 1 }
 0x220   :  { %217 = vsyncpa [#allocation4], 1 }

</bundles_post_ra>
